<compile_context>
chip_gen: v7x
topology: tpu7x:2x2x1
jax: 0.10.0
libtpu: 0.0.40
codegen_flags: <defaults>
</compile_context>

<pallas_src>
import jax
import jax.numpy as jnp
from jax import lax
from jax.experimental import pallas as pl
from jax.experimental.pallas import tpu as pltpu

_F = 20          # feature size fixed by the module (Linear(20, 20))
# Row offsets of each segment inside the packed parameter array
# (each segment start is aligned to an 8-row sublane boundary).
_ROW_W1 = 0      # rows  0..19 : fused weight  linear.weight.T @ rand_weight
_ROW_B1 = 24     # row   24    : fused bias    bias @ rand_weight + 1
_ROW_WT = 32     # rows 32..51 : linear.weight.T (second Linear apply)
_ROW_B2 = 56     # row   56    : bias
_PACK_ROWS = 64  # total packed rows (multiple of 8)


def _affine_vpu(x, w, b):
    """x @ w + b as an unrolled K-step f32 multiply-accumulate (VPU only).

    Exact f32 per-op arithmetic; avoids MXU warm-up/drain and any bf16
    decomposition for a contraction that is <1% of an MXU tile.
    """
    n, kdim = x.shape
    m = w.shape[1]
    acc = jnp.broadcast_to(b, (n, m))
    for k in range(kdim):                       # static unroll, kdim == 20
        acc = acc + x[:, k:k + 1] * w[k:k + 1, :]
    return acc


def fixed_hidden_mlp_kernel(x_ref, p_ref, o_ref):
    """Fused forward: 2 VPU contractions + relu + reductions + exact halving."""
    x = x_ref[...]                                  # (N, 20) f32

    # Static slices of the single packed-parameter VMEM buffer.
    w1 = p_ref[_ROW_W1:_ROW_W1 + _F, :]             # (20, 20) fused Wt @ R
    b1 = p_ref[_ROW_B1:_ROW_B1 + 1, :]              # (1, 20)  fused b @ R + 1
    wt = p_ref[_ROW_WT:_ROW_WT + _F, :]             # (20, 20) Wt
    b2 = p_ref[_ROW_B2:_ROW_B2 + 1, :]              # (1, 20)  b

    # relu((x @ Wt + b) @ R + 1)  ==  relu(x @ (Wt@R) + (b@R + 1))
    h = jnp.maximum(_affine_vpu(x, w1, b1), 0.0)
    # Same Linear applied again.
    h = _affine_vpu(h, wt, b2)

    # Reductions (keepdims -> (1,1) so everything stays on the vector units).
    s = jnp.sum(h, keepdims=True)                   # (1, 1) == X.sum()
    sa = jnp.sum(jnp.abs(h), keepdims=True)         # (1, 1) == X.abs().sum()

    # `while X.abs().sum() > 1: X /= 2` — halving every element scales both
    # sums by exactly 0.5 (power-of-two scaling is exact in IEEE f32 for
    # normal numbers), so the loop count k is the minimal k >= 0 with
    # sa * 2^-k <= 1.  Extract it EXACTLY from sa's exponent/mantissa bits
    # instead of log/ceil approximations (sa >= 0, so the sign bit is 0).
    bits = pltpu.bitcast(sa, jnp.int32)             # (1, 1) int32
    e = (bits >> 23) - 127                          # floor(log2(sa)) for normal sa
    frac = (bits & 0x007FFFFF) != 0                 # sa is not an exact power of 2
    k = e + frac.astype(jnp.int32)                  # halvings needed when sa > 1
    # k < 0  <=>  sa <= 1 (no halving); k > 126 would need sa >= 2^126 —
    # far outside this module's range, clamp keeps the bit pattern normal.
    k = jnp.clip(k, 0, 126)
    scale = pltpu.bitcast((127 - k) << 23, jnp.float32)   # exact 2^-k
    res = s * scale                                 # (1, 1)

    # Single scalar out through SMEM; plain element pick, no extra reduce.
    o_ref[0] = res[0, 0]


def prepare_params(w, b, rand_w):
    """One-time, offline algebraic fusion + packing of the static weights.

    w: (20, 20) torch Linear layout (out_features, in_features)
    b: (20,)    Linear bias
    rand_w: (20, 20) fixed random weight

    Returns one (64, 20) f32 array holding all four parameter segments,
    each aligned to an 8-row boundary, so the kernel needs a single
    parameter DMA.
    """
    w = jnp.asarray(w, jnp.float32)
    b = jnp.asarray(b, jnp.float32)
    rand_w = jnp.asarray(rand_w, jnp.float32)

    wt = w.T                                                        # x @ wt == linear(x) - b
    w1 = jnp.dot(wt, rand_w, precision=lax.Precision.HIGHEST)       # (20, 20)
    b1 = jnp.dot(b.reshape(1, -1), rand_w,
                 precision=lax.Precision.HIGHEST) + 1.0              # (1, 20)

    packed = jnp.zeros((_PACK_ROWS, _F), jnp.float32)
    packed = packed.at[_ROW_W1:_ROW_W1 + _F, :].set(w1)
    packed = packed.at[_ROW_B1, :].set(b1[0])
    packed = packed.at[_ROW_WT:_ROW_WT + _F, :].set(wt)
    packed = packed.at[_ROW_B2, :].set(b)
    return packed


@jax.jit
def fixed_hidden_mlp(x, packed_params):
    """x: (N, 20) f32; packed_params: (64, 20) f32 from prepare_params()."""
    N, F = x.shape
    R, _ = packed_params.shape
    out = pl.pallas_call(
        fixed_hidden_mlp_kernel,
        out_shape=jax.ShapeDtypeStruct((1,), jnp.float32),
        in_specs=[
            pl.BlockSpec((N, F), lambda: (0, 0)),   # activations
            pl.BlockSpec((R, F), lambda: (0, 0)),   # all params, one DMA
        ],
        out_specs=pl.BlockSpec(memory_space=pltpu.MemorySpace.SMEM),
    )(x, packed_params)
    return out[0]   # scalar: X.sum() after the halving loop


if __name__ == "__main__":
    key = jax.random.PRNGKey(0)
    k_x, k_w, k_b, k_r = jax.random.split(key, 4)

    N, F = 2, 20  # batch=2, features=20 (fixed by the module)
    x = jax.random.normal(k_x, (N, F), dtype=jnp.float32)

    # nn.Linear(20, 20) default init: U(-1/sqrt(fan_in), 1/sqrt(fan_in))
    bound = 1.0 / float(F) ** 0.5
    w = jax.random.uniform(k_w, (F, F), jnp.float32, -bound, bound)
    b = jax.random.uniform(k_b, (F,), jnp.float32, -bound, bound)
    # torch.rand((20, 20)) -> U[0, 1)
    rand_w = jax.random.uniform(k_r, (F, F), jnp.float32, 0.0, 1.0)

    # Hoisted out of the hot path: run once, reuse for every forward call.
    packed_params = prepare_params(w, b, rand_w)

    result = jax.block_until_ready(fixed_hidden_mlp(x, packed_params))
    assert result.shape == () and result.dtype == jnp.float32
    assert bool(jnp.isfinite(result))
    print("KERNEL_OK")
</pallas_src>

<mosaic_0001>
module attributes {stable_mosaic.version = 11 : i64} {
  func.func @fixed_hidden_mlp_kernel(%arg0: memref<2x20xf32, #tpu.memory_space<vmem>>, %arg1: memref<64x20xf32, #tpu.memory_space<vmem>>, %arg2: memref<1xf32, #tpu.memory_space<smem>>) attributes {dimension_semantics = [], scalar_prefetch = 0 : i64, scratch_operands = 0 : i64, tpu.core_type = #tpu.core_type<tc>} {
    %c0 = arith.constant 0 : index
    %c0_0 = arith.constant 0 : index
    %0 = vector.load %arg0[%c0, %c0_0] : memref<2x20xf32, #tpu.memory_space<vmem>>, vector<2x20xf32>
    %c0_1 = arith.constant 0 : index
    %c0_2 = arith.constant 0 : index
    %1 = vector.load %arg1[%c0_1, %c0_2] : memref<64x20xf32, #tpu.memory_space<vmem>>, vector<20x20xf32>
    %c24 = arith.constant 24 : index
    %c0_3 = arith.constant 0 : index
    %2 = vector.load %arg1[%c24, %c0_3] : memref<64x20xf32, #tpu.memory_space<vmem>>, vector<1x20xf32>
    %c32 = arith.constant 32 : index
    %c0_4 = arith.constant 0 : index
    %3 = vector.load %arg1[%c32, %c0_4] : memref<64x20xf32, #tpu.memory_space<vmem>>, vector<20x20xf32>
    %c56 = arith.constant 56 : index
    %c0_5 = arith.constant 0 : index
    %4 = vector.load %arg1[%c56, %c0_5] : memref<64x20xf32, #tpu.memory_space<vmem>>, vector<1x20xf32>
    %5 = vector.shape_cast %2 : vector<1x20xf32> to vector<1x20xf32>
    %6 = vector.broadcast %5 : vector<1x20xf32> to vector<2x20xf32>
    %7 = vector.extract_strided_slice %0 {offsets = [0, 0], sizes = [2, 1], strides = [1, 1]} : vector<2x20xf32> to vector<2x1xf32>
    %8 = vector.extract_strided_slice %1 {offsets = [0, 0], sizes = [1, 20], strides = [1, 1]} : vector<20x20xf32> to vector<1x20xf32>
    %9 = vector.broadcast %7 : vector<2x1xf32> to vector<2x20xf32>
    %10 = vector.broadcast %8 : vector<1x20xf32> to vector<2x20xf32>
    %11 = arith.mulf %9, %10 : vector<2x20xf32>
    %12 = arith.addf %6, %11 : vector<2x20xf32>
    %13 = vector.extract_strided_slice %0 {offsets = [0, 1], sizes = [2, 1], strides = [1, 1]} : vector<2x20xf32> to vector<2x1xf32>
    %14 = vector.extract_strided_slice %1 {offsets = [1, 0], sizes = [1, 20], strides = [1, 1]} : vector<20x20xf32> to vector<1x20xf32>
    %15 = vector.broadcast %13 : vector<2x1xf32> to vector<2x20xf32>
    %16 = vector.broadcast %14 : vector<1x20xf32> to vector<2x20xf32>
    %17 = arith.mulf %15, %16 : vector<2x20xf32>
    %18 = arith.addf %12, %17 : vector<2x20xf32>
    %19 = vector.extract_strided_slice %0 {offsets = [0, 2], sizes = [2, 1], strides = [1, 1]} : vector<2x20xf32> to vector<2x1xf32>
    %20 = vector.extract_strided_slice %1 {offsets = [2, 0], sizes = [1, 20], strides = [1, 1]} : vector<20x20xf32> to vector<1x20xf32>
    %21 = vector.broadcast %19 : vector<2x1xf32> to vector<2x20xf32>
    %22 = vector.broadcast %20 : vector<1x20xf32> to vector<2x20xf32>
    %23 = arith.mulf %21, %22 : vector<2x20xf32>
    %24 = arith.addf %18, %23 : vector<2x20xf32>
    %25 = vector.extract_strided_slice %0 {offsets = [0, 3], sizes = [2, 1], strides = [1, 1]} : vector<2x20xf32> to vector<2x1xf32>
    %26 = vector.extract_strided_slice %1 {offsets = [3, 0], sizes = [1, 20], strides = [1, 1]} : vector<20x20xf32> to vector<1x20xf32>
    %27 = vector.broadcast %25 : vector<2x1xf32> to vector<2x20xf32>
    %28 = vector.broadcast %26 : vector<1x20xf32> to vector<2x20xf32>
    %29 = arith.mulf %27, %28 : vector<2x20xf32>
    %30 = arith.addf %24, %29 : vector<2x20xf32>
    %31 = vector.extract_strided_slice %0 {offsets = [0, 4], sizes = [2, 1], strides = [1, 1]} : vector<2x20xf32> to vector<2x1xf32>
    %32 = vector.extract_strided_slice %1 {offsets = [4, 0], sizes = [1, 20], strides = [1, 1]} : vector<20x20xf32> to vector<1x20xf32>
    %33 = vector.broadcast %31 : vector<2x1xf32> to vector<2x20xf32>
    %34 = vector.broadcast %32 : vector<1x20xf32> to vector<2x20xf32>
    %35 = arith.mulf %33, %34 : vector<2x20xf32>
    %36 = arith.addf %30, %35 : vector<2x20xf32>
    %37 = vector.extract_strided_slice %0 {offsets = [0, 5], sizes = [2, 1], strides = [1, 1]} : vector<2x20xf32> to vector<2x1xf32>
    %38 = vector.extract_strided_slice %1 {offsets = [5, 0], sizes = [1, 20], strides = [1, 1]} : vector<20x20xf32> to vector<1x20xf32>
    %39 = vector.broadcast %37 : vector<2x1xf32> to vector<2x20xf32>
    %40 = vector.broadcast %38 : vector<1x20xf32> to vector<2x20xf32>
    %41 = arith.mulf %39, %40 : vector<2x20xf32>
    %42 = arith.addf %36, %41 : vector<2x20xf32>
    %43 = vector.extract_strided_slice %0 {offsets = [0, 6], sizes = [2, 1], strides = [1, 1]} : vector<2x20xf32> to vector<2x1xf32>
    %44 = vector.extract_strided_slice %1 {offsets = [6, 0], sizes = [1, 20], strides = [1, 1]} : vector<20x20xf32> to vector<1x20xf32>
    %45 = vector.broadcast %43 : vector<2x1xf32> to vector<2x20xf32>
    %46 = vector.broadcast %44 : vector<1x20xf32> to vector<2x20xf32>
    %47 = arith.mulf %45, %46 : vector<2x20xf32>
    %48 = arith.addf %42, %47 : vector<2x20xf32>
    %49 = vector.extract_strided_slice %0 {offsets = [0, 7], sizes = [2, 1], strides = [1, 1]} : vector<2x20xf32> to vector<2x1xf32>
    %50 = vector.extract_strided_slice %1 {offsets = [7, 0], sizes = [1, 20], strides = [1, 1]} : vector<20x20xf32> to vector<1x20xf32>
    %51 = vector.broadcast %49 : vector<2x1xf32> to vector<2x20xf32>
    %52 = vector.broadcast %50 : vector<1x20xf32> to vector<2x20xf32>
    %53 = arith.mulf %51, %52 : vector<2x20xf32>
    %54 = arith.addf %48, %53 : vector<2x20xf32>
    %55 = vector.extract_strided_slice %0 {offsets = [0, 8], sizes = [2, 1], strides = [1, 1]} : vector<2x20xf32> to vector<2x1xf32>
    %56 = vector.extract_strided_slice %1 {offsets = [8, 0], sizes = [1, 20], strides = [1, 1]} : vector<20x20xf32> to vector<1x20xf32>
    %57 = vector.broadcast %55 : vector<2x1xf32> to vector<2x20xf32>
    %58 = vector.broadcast %56 : vector<1x20xf32> to vector<2x20xf32>
    %59 = arith.mulf %57, %58 : vector<2x20xf32>
    %60 = arith.addf %54, %59 : vector<2x20xf32>
    %61 = vector.extract_strided_slice %0 {offsets = [0, 9], sizes = [2, 1], strides = [1, 1]} : vector<2x20xf32> to vector<2x1xf32>
    %62 = vector.extract_strided_slice %1 {offsets = [9, 0], sizes = [1, 20], strides = [1, 1]} : vector<20x20xf32> to vector<1x20xf32>
    %63 = vector.broadcast %61 : vector<2x1xf32> to vector<2x20xf32>
    %64 = vector.broadcast %62 : vector<1x20xf32> to vector<2x20xf32>
    %65 = arith.mulf %63, %64 : vector<2x20xf32>
    %66 = arith.addf %60, %65 : vector<2x20xf32>
    %67 = vector.extract_strided_slice %0 {offsets = [0, 10], sizes = [2, 1], strides = [1, 1]} : vector<2x20xf32> to vector<2x1xf32>
    %68 = vector.extract_strided_slice %1 {offsets = [10, 0], sizes = [1, 20], strides = [1, 1]} : vector<20x20xf32> to vector<1x20xf32>
    %69 = vector.broadcast %67 : vector<2x1xf32> to vector<2x20xf32>
    %70 = vector.broadcast %68 : vector<1x20xf32> to vector<2x20xf32>
    %71 = arith.mulf %69, %70 : vector<2x20xf32>
    %72 = arith.addf %66, %71 : vector<2x20xf32>
    %73 = vector.extract_strided_slice %0 {offsets = [0, 11], sizes = [2, 1], strides = [1, 1]} : vector<2x20xf32> to vector<2x1xf32>
    %74 = vector.extract_strided_slice %1 {offsets = [11, 0], sizes = [1, 20], strides = [1, 1]} : vector<20x20xf32> to vector<1x20xf32>
    %75 = vector.broadcast %73 : vector<2x1xf32> to vector<2x20xf32>
    %76 = vector.broadcast %74 : vector<1x20xf32> to vector<2x20xf32>
    %77 = arith.mulf %75, %76 : vector<2x20xf32>
    %78 = arith.addf %72, %77 : vector<2x20xf32>
    %79 = vector.extract_strided_slice %0 {offsets = [0, 12], sizes = [2, 1], strides = [1, 1]} : vector<2x20xf32> to vector<2x1xf32>
    %80 = vector.extract_strided_slice %1 {offsets = [12, 0], sizes = [1, 20], strides = [1, 1]} : vector<20x20xf32> to vector<1x20xf32>
    %81 = vector.broadcast %79 : vector<2x1xf32> to vector<2x20xf32>
    %82 = vector.broadcast %80 : vector<1x20xf32> to vector<2x20xf32>
    %83 = arith.mulf %81, %82 : vector<2x20xf32>
    %84 = arith.addf %78, %83 : vector<2x20xf32>
    %85 = vector.extract_strided_slice %0 {offsets = [0, 13], sizes = [2, 1], strides = [1, 1]} : vector<2x20xf32> to vector<2x1xf32>
    %86 = vector.extract_strided_slice %1 {offsets = [13, 0], sizes = [1, 20], strides = [1, 1]} : vector<20x20xf32> to vector<1x20xf32>
    %87 = vector.broadcast %85 : vector<2x1xf32> to vector<2x20xf32>
    %88 = vector.broadcast %86 : vector<1x20xf32> to vector<2x20xf32>
    %89 = arith.mulf %87, %88 : vector<2x20xf32>
    %90 = arith.addf %84, %89 : vector<2x20xf32>
    %91 = vector.extract_strided_slice %0 {offsets = [0, 14], sizes = [2, 1], strides = [1, 1]} : vector<2x20xf32> to vector<2x1xf32>
    %92 = vector.extract_strided_slice %1 {offsets = [14, 0], sizes = [1, 20], strides = [1, 1]} : vector<20x20xf32> to vector<1x20xf32>
    %93 = vector.broadcast %91 : vector<2x1xf32> to vector<2x20xf32>
    %94 = vector.broadcast %92 : vector<1x20xf32> to vector<2x20xf32>
    %95 = arith.mulf %93, %94 : vector<2x20xf32>
    %96 = arith.addf %90, %95 : vector<2x20xf32>
    %97 = vector.extract_strided_slice %0 {offsets = [0, 15], sizes = [2, 1], strides = [1, 1]} : vector<2x20xf32> to vector<2x1xf32>
    %98 = vector.extract_strided_slice %1 {offsets = [15, 0], sizes = [1, 20], strides = [1, 1]} : vector<20x20xf32> to vector<1x20xf32>
    %99 = vector.broadcast %97 : vector<2x1xf32> to vector<2x20xf32>
    %100 = vector.broadcast %98 : vector<1x20xf32> to vector<2x20xf32>
    %101 = arith.mulf %99, %100 : vector<2x20xf32>
    %102 = arith.addf %96, %101 : vector<2x20xf32>
    %103 = vector.extract_strided_slice %0 {offsets = [0, 16], sizes = [2, 1], strides = [1, 1]} : vector<2x20xf32> to vector<2x1xf32>
    %104 = vector.extract_strided_slice %1 {offsets = [16, 0], sizes = [1, 20], strides = [1, 1]} : vector<20x20xf32> to vector<1x20xf32>
    %105 = vector.broadcast %103 : vector<2x1xf32> to vector<2x20xf32>
    %106 = vector.broadcast %104 : vector<1x20xf32> to vector<2x20xf32>
    %107 = arith.mulf %105, %106 : vector<2x20xf32>
    %108 = arith.addf %102, %107 : vector<2x20xf32>
    %109 = vector.extract_strided_slice %0 {offsets = [0, 17], sizes = [2, 1], strides = [1, 1]} : vector<2x20xf32> to vector<2x1xf32>
    %110 = vector.extract_strided_slice %1 {offsets = [17, 0], sizes = [1, 20], strides = [1, 1]} : vector<20x20xf32> to vector<1x20xf32>
    %111 = vector.broadcast %109 : vector<2x1xf32> to vector<2x20xf32>
    %112 = vector.broadcast %110 : vector<1x20xf32> to vector<2x20xf32>
    %113 = arith.mulf %111, %112 : vector<2x20xf32>
    %114 = arith.addf %108, %113 : vector<2x20xf32>
    %115 = vector.extract_strided_slice %0 {offsets = [0, 18], sizes = [2, 1], strides = [1, 1]} : vector<2x20xf32> to vector<2x1xf32>
    %116 = vector.extract_strided_slice %1 {offsets = [18, 0], sizes = [1, 20], strides = [1, 1]} : vector<20x20xf32> to vector<1x20xf32>
    %117 = vector.broadcast %115 : vector<2x1xf32> to vector<2x20xf32>
    %118 = vector.broadcast %116 : vector<1x20xf32> to vector<2x20xf32>
    %119 = arith.mulf %117, %118 : vector<2x20xf32>
    %120 = arith.addf %114, %119 : vector<2x20xf32>
    %121 = vector.extract_strided_slice %0 {offsets = [0, 19], sizes = [2, 1], strides = [1, 1]} : vector<2x20xf32> to vector<2x1xf32>
    %122 = vector.extract_strided_slice %1 {offsets = [19, 0], sizes = [1, 20], strides = [1, 1]} : vector<20x20xf32> to vector<1x20xf32>
    %123 = vector.broadcast %121 : vector<2x1xf32> to vector<2x20xf32>
    %124 = vector.broadcast %122 : vector<1x20xf32> to vector<2x20xf32>
    %125 = arith.mulf %123, %124 : vector<2x20xf32>
    %126 = arith.addf %120, %125 : vector<2x20xf32>
    %cst = arith.constant 0.000000e+00 : f32
    %127 = vector.broadcast %cst : f32 to vector<2x20xf32>
    %128 = arith.maximumf %126, %127 : vector<2x20xf32>
    %129 = vector.shape_cast %4 : vector<1x20xf32> to vector<1x20xf32>
    %130 = vector.broadcast %129 : vector<1x20xf32> to vector<2x20xf32>
    %131 = vector.extract_strided_slice %128 {offsets = [0, 0], sizes = [2, 1], strides = [1, 1]} : vector<2x20xf32> to vector<2x1xf32>
    %132 = vector.extract_strided_slice %3 {offsets = [0, 0], sizes = [1, 20], strides = [1, 1]} : vector<20x20xf32> to vector<1x20xf32>
    %133 = vector.broadcast %131 : vector<2x1xf32> to vector<2x20xf32>
    %134 = vector.broadcast %132 : vector<1x20xf32> to vector<2x20xf32>
    %135 = arith.mulf %133, %134 : vector<2x20xf32>
    %136 = arith.addf %130, %135 : vector<2x20xf32>
    %137 = vector.extract_strided_slice %128 {offsets = [0, 1], sizes = [2, 1], strides = [1, 1]} : vector<2x20xf32> to vector<2x1xf32>
    %138 = vector.extract_strided_slice %3 {offsets = [1, 0], sizes = [1, 20], strides = [1, 1]} : vector<20x20xf32> to vector<1x20xf32>
    %139 = vector.broadcast %137 : vector<2x1xf32> to vector<2x20xf32>
    %140 = vector.broadcast %138 : vector<1x20xf32> to vector<2x20xf32>
    %141 = arith.mulf %139, %140 : vector<2x20xf32>
    %142 = arith.addf %136, %141 : vector<2x20xf32>
    %143 = vector.extract_strided_slice %128 {offsets = [0, 2], sizes = [2, 1], strides = [1, 1]} : vector<2x20xf32> to vector<2x1xf32>
    %144 = vector.extract_strided_slice %3 {offsets = [2, 0], sizes = [1, 20], strides = [1, 1]} : vector<20x20xf32> to vector<1x20xf32>
    %145 = vector.broadcast %143 : vector<2x1xf32> to vector<2x20xf32>
    %146 = vector.broadcast %144 : vector<1x20xf32> to vector<2x20xf32>
    %147 = arith.mulf %145, %146 : vector<2x20xf32>
    %148 = arith.addf %142, %147 : vector<2x20xf32>
    %149 = vector.extract_strided_slice %128 {offsets = [0, 3], sizes = [2, 1], strides = [1, 1]} : vector<2x20xf32> to vector<2x1xf32>
    %150 = vector.extract_strided_slice %3 {offsets = [3, 0], sizes = [1, 20], strides = [1, 1]} : vector<20x20xf32> to vector<1x20xf32>
    %151 = vector.broadcast %149 : vector<2x1xf32> to vector<2x20xf32>
    %152 = vector.broadcast %150 : vector<1x20xf32> to vector<2x20xf32>
    %153 = arith.mulf %151, %152 : vector<2x20xf32>
    %154 = arith.addf %148, %153 : vector<2x20xf32>
    %155 = vector.extract_strided_slice %128 {offsets = [0, 4], sizes = [2, 1], strides = [1, 1]} : vector<2x20xf32> to vector<2x1xf32>
    %156 = vector.extract_strided_slice %3 {offsets = [4, 0], sizes = [1, 20], strides = [1, 1]} : vector<20x20xf32> to vector<1x20xf32>
    %157 = vector.broadcast %155 : vector<2x1xf32> to vector<2x20xf32>
    %158 = vector.broadcast %156 : vector<1x20xf32> to vector<2x20xf32>
    %159 = arith.mulf %157, %158 : vector<2x20xf32>
    %160 = arith.addf %154, %159 : vector<2x20xf32>
    %161 = vector.extract_strided_slice %128 {offsets = [0, 5], sizes = [2, 1], strides = [1, 1]} : vector<2x20xf32> to vector<2x1xf32>
    %162 = vector.extract_strided_slice %3 {offsets = [5, 0], sizes = [1, 20], strides = [1, 1]} : vector<20x20xf32> to vector<1x20xf32>
    %163 = vector.broadcast %161 : vector<2x1xf32> to vector<2x20xf32>
    %164 = vector.broadcast %162 : vector<1x20xf32> to vector<2x20xf32>
    %165 = arith.mulf %163, %164 : vector<2x20xf32>
    %166 = arith.addf %160, %165 : vector<2x20xf32>
    %167 = vector.extract_strided_slice %128 {offsets = [0, 6], sizes = [2, 1], strides = [1, 1]} : vector<2x20xf32> to vector<2x1xf32>
    %168 = vector.extract_strided_slice %3 {offsets = [6, 0], sizes = [1, 20], strides = [1, 1]} : vector<20x20xf32> to vector<1x20xf32>
    %169 = vector.broadcast %167 : vector<2x1xf32> to vector<2x20xf32>
    %170 = vector.broadcast %168 : vector<1x20xf32> to vector<2x20xf32>
    %171 = arith.mulf %169, %170 : vector<2x20xf32>
    %172 = arith.addf %166, %171 : vector<2x20xf32>
    %173 = vector.extract_strided_slice %128 {offsets = [0, 7], sizes = [2, 1], strides = [1, 1]} : vector<2x20xf32> to vector<2x1xf32>
    %174 = vector.extract_strided_slice %3 {offsets = [7, 0], sizes = [1, 20], strides = [1, 1]} : vector<20x20xf32> to vector<1x20xf32>
    %175 = vector.broadcast %173 : vector<2x1xf32> to vector<2x20xf32>
    %176 = vector.broadcast %174 : vector<1x20xf32> to vector<2x20xf32>
    %177 = arith.mulf %175, %176 : vector<2x20xf32>
    %178 = arith.addf %172, %177 : vector<2x20xf32>
    %179 = vector.extract_strided_slice %128 {offsets = [0, 8], sizes = [2, 1], strides = [1, 1]} : vector<2x20xf32> to vector<2x1xf32>
    %180 = vector.extract_strided_slice %3 {offsets = [8, 0], sizes = [1, 20], strides = [1, 1]} : vector<20x20xf32> to vector<1x20xf32>
    %181 = vector.broadcast %179 : vector<2x1xf32> to vector<2x20xf32>
    %182 = vector.broadcast %180 : vector<1x20xf32> to vector<2x20xf32>
    %183 = arith.mulf %181, %182 : vector<2x20xf32>
    %184 = arith.addf %178, %183 : vector<2x20xf32>
    %185 = vector.extract_strided_slice %128 {offsets = [0, 9], sizes = [2, 1], strides = [1, 1]} : vector<2x20xf32> to vector<2x1xf32>
    %186 = vector.extract_strided_slice %3 {offsets = [9, 0], sizes = [1, 20], strides = [1, 1]} : vector<20x20xf32> to vector<1x20xf32>
    %187 = vector.broadcast %185 : vector<2x1xf32> to vector<2x20xf32>
    %188 = vector.broadcast %186 : vector<1x20xf32> to vector<2x20xf32>
    %189 = arith.mulf %187, %188 : vector<2x20xf32>
    %190 = arith.addf %184, %189 : vector<2x20xf32>
    %191 = vector.extract_strided_slice %128 {offsets = [0, 10], sizes = [2, 1], strides = [1, 1]} : vector<2x20xf32> to vector<2x1xf32>
    %192 = vector.extract_strided_slice %3 {offsets = [10, 0], sizes = [1, 20], strides = [1, 1]} : vector<20x20xf32> to vector<1x20xf32>
    %193 = vector.broadcast %191 : vector<2x1xf32> to vector<2x20xf32>
    %194 = vector.broadcast %192 : vector<1x20xf32> to vector<2x20xf32>
    %195 = arith.mulf %193, %194 : vector<2x20xf32>
    %196 = arith.addf %190, %195 : vector<2x20xf32>
    %197 = vector.extract_strided_slice %128 {offsets = [0, 11], sizes = [2, 1], strides = [1, 1]} : vector<2x20xf32> to vector<2x1xf32>
    %198 = vector.extract_strided_slice %3 {offsets = [11, 0], sizes = [1, 20], strides = [1, 1]} : vector<20x20xf32> to vector<1x20xf32>
    %199 = vector.broadcast %197 : vector<2x1xf32> to vector<2x20xf32>
    %200 = vector.broadcast %198 : vector<1x20xf32> to vector<2x20xf32>
    %201 = arith.mulf %199, %200 : vector<2x20xf32>
    %202 = arith.addf %196, %201 : vector<2x20xf32>
    %203 = vector.extract_strided_slice %128 {offsets = [0, 12], sizes = [2, 1], strides = [1, 1]} : vector<2x20xf32> to vector<2x1xf32>
    %204 = vector.extract_strided_slice %3 {offsets = [12, 0], sizes = [1, 20], strides = [1, 1]} : vector<20x20xf32> to vector<1x20xf32>
    %205 = vector.broadcast %203 : vector<2x1xf32> to vector<2x20xf32>
    %206 = vector.broadcast %204 : vector<1x20xf32> to vector<2x20xf32>
    %207 = arith.mulf %205, %206 : vector<2x20xf32>
    %208 = arith.addf %202, %207 : vector<2x20xf32>
    %209 = vector.extract_strided_slice %128 {offsets = [0, 13], sizes = [2, 1], strides = [1, 1]} : vector<2x20xf32> to vector<2x1xf32>
    %210 = vector.extract_strided_slice %3 {offsets = [13, 0], sizes = [1, 20], strides = [1, 1]} : vector<20x20xf32> to vector<1x20xf32>
    %211 = vector.broadcast %209 : vector<2x1xf32> to vector<2x20xf32>
    %212 = vector.broadcast %210 : vector<1x20xf32> to vector<2x20xf32>
    %213 = arith.mulf %211, %212 : vector<2x20xf32>
    %214 = arith.addf %208, %213 : vector<2x20xf32>
    %215 = vector.extract_strided_slice %128 {offsets = [0, 14], sizes = [2, 1], strides = [1, 1]} : vector<2x20xf32> to vector<2x1xf32>
    %216 = vector.extract_strided_slice %3 {offsets = [14, 0], sizes = [1, 20], strides = [1, 1]} : vector<20x20xf32> to vector<1x20xf32>
    %217 = vector.broadcast %215 : vector<2x1xf32> to vector<2x20xf32>
    %218 = vector.broadcast %216 : vector<1x20xf32> to vector<2x20xf32>
    %219 = arith.mulf %217, %218 : vector<2x20xf32>
    %220 = arith.addf %214, %219 : vector<2x20xf32>
    %221 = vector.extract_strided_slice %128 {offsets = [0, 15], sizes = [2, 1], strides = [1, 1]} : vector<2x20xf32> to vector<2x1xf32>
    %222 = vector.extract_strided_slice %3 {offsets = [15, 0], sizes = [1, 20], strides = [1, 1]} : vector<20x20xf32> to vector<1x20xf32>
    %223 = vector.broadcast %221 : vector<2x1xf32> to vector<2x20xf32>
    %224 = vector.broadcast %222 : vector<1x20xf32> to vector<2x20xf32>
    %225 = arith.mulf %223, %224 : vector<2x20xf32>
    %226 = arith.addf %220, %225 : vector<2x20xf32>
    %227 = vector.extract_strided_slice %128 {offsets = [0, 16], sizes = [2, 1], strides = [1, 1]} : vector<2x20xf32> to vector<2x1xf32>
    %228 = vector.extract_strided_slice %3 {offsets = [16, 0], sizes = [1, 20], strides = [1, 1]} : vector<20x20xf32> to vector<1x20xf32>
    %229 = vector.broadcast %227 : vector<2x1xf32> to vector<2x20xf32>
    %230 = vector.broadcast %228 : vector<1x20xf32> to vector<2x20xf32>
    %231 = arith.mulf %229, %230 : vector<2x20xf32>
    %232 = arith.addf %226, %231 : vector<2x20xf32>
    %233 = vector.extract_strided_slice %128 {offsets = [0, 17], sizes = [2, 1], strides = [1, 1]} : vector<2x20xf32> to vector<2x1xf32>
    %234 = vector.extract_strided_slice %3 {offsets = [17, 0], sizes = [1, 20], strides = [1, 1]} : vector<20x20xf32> to vector<1x20xf32>
    %235 = vector.broadcast %233 : vector<2x1xf32> to vector<2x20xf32>
    %236 = vector.broadcast %234 : vector<1x20xf32> to vector<2x20xf32>
    %237 = arith.mulf %235, %236 : vector<2x20xf32>
    %238 = arith.addf %232, %237 : vector<2x20xf32>
    %239 = vector.extract_strided_slice %128 {offsets = [0, 18], sizes = [2, 1], strides = [1, 1]} : vector<2x20xf32> to vector<2x1xf32>
    %240 = vector.extract_strided_slice %3 {offsets = [18, 0], sizes = [1, 20], strides = [1, 1]} : vector<20x20xf32> to vector<1x20xf32>
    %241 = vector.broadcast %239 : vector<2x1xf32> to vector<2x20xf32>
    %242 = vector.broadcast %240 : vector<1x20xf32> to vector<2x20xf32>
    %243 = arith.mulf %241, %242 : vector<2x20xf32>
    %244 = arith.addf %238, %243 : vector<2x20xf32>
    %245 = vector.extract_strided_slice %128 {offsets = [0, 19], sizes = [2, 1], strides = [1, 1]} : vector<2x20xf32> to vector<2x1xf32>
    %246 = vector.extract_strided_slice %3 {offsets = [19, 0], sizes = [1, 20], strides = [1, 1]} : vector<20x20xf32> to vector<1x20xf32>
    %247 = vector.broadcast %245 : vector<2x1xf32> to vector<2x20xf32>
    %248 = vector.broadcast %246 : vector<1x20xf32> to vector<2x20xf32>
    %249 = arith.mulf %247, %248 : vector<2x20xf32>
    %250 = arith.addf %244, %249 : vector<2x20xf32>
    %251 = vector.shape_cast %250 : vector<2x20xf32> to vector<1x2x20xf32>
    %cst_6 = arith.constant dense<0.000000e+00> : vector<1xf32>
    %252 = vector.multi_reduction <add>, %251, %cst_6 [1, 2] : vector<1x2x20xf32> to vector<1xf32>
    %253 = vector.shape_cast %252 : vector<1xf32> to vector<1x1x1xf32>
    %254 = vector.extract %253[0, 0, 0] : f32 from vector<1x1x1xf32>
    %255 = vector.broadcast %254 : f32 to vector<1x1xf32>
    %256 = math.absf %250 : vector<2x20xf32>
    %257 = vector.shape_cast %256 : vector<2x20xf32> to vector<1x2x20xf32>
    %cst_7 = arith.constant dense<0.000000e+00> : vector<1xf32>
    %258 = vector.multi_reduction <add>, %257, %cst_7 [1, 2] : vector<1x2x20xf32> to vector<1xf32>
    %259 = vector.shape_cast %258 : vector<1xf32> to vector<1x1x1xf32>
    %260 = vector.extract %259[0, 0, 0] : f32 from vector<1x1x1xf32>
    %261 = vector.broadcast %260 : f32 to vector<1x1xf32>
    %262 = tpu.bitcast %261 : vector<1x1xf32> -> vector<1x1xi32>
    %c23_i32 = arith.constant 23 : i32
    %263 = vector.broadcast %c23_i32 : i32 to vector<1x1xi32>
    %264 = arith.shrsi %262, %263 : vector<1x1xi32>
    %c127_i32 = arith.constant 127 : i32
    %265 = vector.broadcast %c127_i32 : i32 to vector<1x1xi32>
    %266 = arith.subi %264, %265 : vector<1x1xi32>
    %c8388607_i32 = arith.constant 8388607 : i32
    %267 = vector.broadcast %c8388607_i32 : i32 to vector<1x1xi32>
    %268 = arith.andi %262, %267 : vector<1x1xi32>
    %c0_i32 = arith.constant 0 : i32
    %269 = vector.broadcast %c0_i32 : i32 to vector<1x1xi32>
    %270 = arith.cmpi ne, %268, %269 : vector<1x1xi32>
    %271 = arith.extui %270 : vector<1x1xi1> to vector<1x1xi32>
    %272 = arith.addi %266, %271 : vector<1x1xi32>
    %c0_i32_8 = arith.constant 0 : i32
    %c126_i32 = arith.constant 126 : i32
    %273 = vector.broadcast %c0_i32_8 : i32 to vector<1x1xi32>
    %274 = arith.maxsi %273, %272 : vector<1x1xi32>
    %275 = vector.broadcast %c126_i32 : i32 to vector<1x1xi32>
    %276 = arith.minsi %275, %274 : vector<1x1xi32>
    %c127_i32_9 = arith.constant 127 : i32
    %277 = vector.broadcast %c127_i32_9 : i32 to vector<1x1xi32>
    %278 = arith.subi %277, %276 : vector<1x1xi32>
    %c23_i32_10 = arith.constant 23 : i32
    %279 = vector.broadcast %c23_i32_10 : i32 to vector<1x1xi32>
    %280 = arith.shli %278, %279 : vector<1x1xi32>
    %281 = tpu.bitcast %280 : vector<1x1xi32> -> vector<1x1xf32>
    %282 = arith.mulf %255, %281 : vector<1x1xf32>
    %283 = vector.extract %282[0, 0] : f32 from vector<1x1xf32>
    %c0_11 = arith.constant 0 : index
    %284 = memref.load %arg2[%c0_11] : memref<1xf32, #tpu.memory_space<smem>>
    memref.store %283, %arg2[%c0_11] : memref<1xf32, #tpu.memory_space<smem>>
    return
  }
}

</mosaic_0001>

<bundles_post_ra>
// kernel: fixed_hidden_mlp.1
= control target key start
LH: loop header
LB: loop body
LE: loop exit
PB: predicated region body
PF: predicated region fallthrough
CT: control target
= control target key end

     0   :  { %v570_v1 = vmov 2   ;;  %v571_v2 = vmov 0   ;;  %s741_s0 = inlined_call_operand.vmem [shape: f32[2,20], index: 0, kind: input, shape index: {}]   ;;  %s742_s1 = inlined_call_operand.vmem [shape: f32[64,20], index: 1, kind: input, shape index: {}]   ;;  %s743_s2 = inlined_call_operand.hbm [shape: f32[1], index: 2, kind: output, shape index: {}]  }
   0x1   :  { %v12_v0 = vld [vmem:[%s741_s0] sm:$0x3]  ;;  %519 = vset.pattern.permute.xlu1 %v570_v1  ;;  %517 = vset.pattern.permute.xlu0 %v571_v2 }
   0x2   :  { %47 = vperm.xlu1 %519, %v12_v0   ;;  %27 = vperm.xlu0 %517, %v12_v0  }
   0x3   :  { %7 = vsyncpa [#allocation3], 0  ;;  %v572_v3 = vmov 3   ;;  %v573_v4 = vmov 1   ;;  %v574_v5 = vmov 4   ;;  %v575_v6 = vmov 5  }
   0x4   :  { %v576_v7 = vmov 6   ;;  %v577_v8 = vmov 8   ;;  %v578_v9 = vmov 7   ;;  %v579_v10 = vmov 11   ;;  %v13_v24 = vld [vmem:[%s742_s1] sm:$0xff]  ;;  %v14_v58 = vld [vmem:[%s742_s1 + $0x8] sm:$0xff] }
   0x5   :  { %v580_v11 = vmov 9   ;;  %v581_v12 = vmov 14   ;;  %v582_v13 = vmov 10   ;;  %v583_v14 = vmov 17   ;;  %v487_v30 = vld [vmem:[%s742_s1 + $0x18] ss:$0 sm:$0xff] }
   0x6   :  { %520 = vset.pattern.permute.xlu1 %v572_v3  ;;  %518 = vset.pattern.permute.xlu0 %v573_v4  ;;  %v584_v15 = vmov 12   ;;  %v585_v16 = vmov 13   ;;  %v586_v17 = vmov 15   ;;  %v587_v18 = vmov 16   ;;  %s558_s30 = scalar_lea.hbm %s743_s2, 16 }
   0x7   :  { %57 = vperm.xlu1 %520, %v12_v0   ;;  %37 = vperm.xlu0 %518, %v12_v0   ;;  %v588_v19 = vmov 18   ;;  %v589_v20 = vmov 19   ;;  %v30_v21 = vlaneseq  ;;  %vm432_vm0 = vcmask 156672   ;;  %p559_p0 = scmp.ne.s32.totalorder %s743_s2, %s558_s30  ;;  %p562_p1 = scmp.lt.u32.totalorder %s558_s30, %s743_s2 }
   0x9   :  { %v31_v22 = vshrl.u32 %v30_v21, 7  ;;  %p564_p2 = pnand %p562_p1, %p559_p0 }
   0xb   :  { %521 = vset.pattern.permute.xlu1 %v574_v5  ;;  %522 = vset.pattern.permute.xlu0 %v575_v6  ;;  %v629_v23 = vsub.s32 0, %v31_v22  ;;  %v635_v26 = vsub.s32 1, %v31_v22  ;;  %v637_v27 = vsub.s32 2, %v31_v22  ;;  %v642_v32 = vsub.s32 3, %v31_v22 }
   0xc   :  { %67 = vperm.xlu1 %521, %v12_v0   ;;  %77 = vperm.xlu0 %522, %v12_v0   ;;  %v645_v34 = vsub.s32 4, %v31_v22  ;;  %v648_v39 = vsub.s32 5, %v31_v22  ;;  %v653_v46 = vsub.s32 6, %v31_v22  ;;  %v656_v55 = vsub.s32 7, %v31_v22 }
   0xd   :  { %v33_v25 = vrot.slane %v13_v24, %v629_v23  ;;  %v43_v33 = vrot.slane %v13_v24, %v635_v26  ;;  %v53_v35 = vrot.slane %v13_v24, %v637_v27  ;;  %v63_v40 = vrot.slane %v13_v24, %v642_v32 }
   0xe   :  { %v73_v42 = vrot.slane %v13_v24, %v645_v34  ;;  %v83_v45 = vrot.slane %v13_v24, %v648_v39  ;;  %v93_v54 = vrot.slane %v13_v24, %v653_v46  ;;  %v103_v61 = vrot.slane %v13_v24, %v656_v55 }
   0xf   :  { %v113_v62 = vrot.slane %v14_v58, %v629_v23  ;;  %v123_v22 = vrot.slane %v14_v58, %v635_v26 }
  0x10   :  { %523 = vset.pattern.permute.xlu1 %v576_v7  ;;  %525 = vset.pattern.permute.xlu0 %v577_v8 }
  0x11   :  { %87 = vperm.xlu1 %523, %v12_v0   ;;  %107 = vperm.xlu0 %525, %v12_v0  }
  0x15   :  { %524 = vset.pattern.permute.xlu1 %v578_v9  ;;  %528 = vset.pattern.permute.xlu0 %v579_v10 }
  0x16   :  { %97 = vperm.xlu1 %524, %v12_v0   ;;  %137 = vperm.xlu0 %528, %v12_v0  }
  0x1a   :  { %526 = vset.pattern.permute.xlu1 %v580_v11  ;;  %531 = vset.pattern.permute.xlu0 %v581_v12 }
  0x1b   :  { %117 = vperm.xlu1 %526, %v12_v0   ;;  %167 = vperm.xlu0 %531, %v12_v0  }
  0x1f   :  { %527 = vset.pattern.permute.xlu1 %v582_v13  ;;  %534 = vset.pattern.permute.xlu0 %v583_v14 }
  0x20   :  { %127 = vperm.xlu1 %527, %v12_v0   ;;  %197 = vperm.xlu0 %534, %v12_v0  }
  0x24   :  { %529 = vset.pattern.permute.xlu1 %v584_v15  ;;  %537 = vset.pattern.permute.xlu0 %v571_v2 }
  0x25   :  { %147 = vperm.xlu1 %529, %v12_v0  }
  0x29   :  { %530 = vset.pattern.permute.xlu1 %v585_v16 }
  0x2a   :  { %157 = vperm.xlu1 %530, %v12_v0  }
  0x2e   :  { %532 = vset.pattern.permute.xlu1 %v586_v17 }
  0x2f   :  { %177 = vperm.xlu1 %532, %v12_v0  }
  0x33   :  { %533 = vset.pattern.permute.xlu1 %v587_v18 }
  0x34   :  { %187 = vperm.xlu1 %533, %v12_v0  }
  0x38   :  { %535 = vset.pattern.permute.xlu1 %v588_v19 }
  0x39   :  { %207 = vperm.xlu1 %535, %v12_v0  }
  0x3d   :  { %536 = vset.pattern.permute.xlu1 %v589_v20 }
  0x3e   :  { %217 = vperm.xlu1 %536, %v12_v0  }
  0x42   :  { %538 = vset.pattern.permute.xlu1 %v573_v4 }
  0x81   :  { %v48_v28 = vpop.permute.xlu1 %47  ;;  %v28_v29 = vpop.permute.xlu0 %27 }
  0x82   :  { %v34_v31 = vmul.f32 %v33_v25, %v28_v29  ;;  %v54_v43 = vmul.f32 %v53_v35, %v48_v28  ;;  %v143_v35 = vrot.slane %v14_v58, %v642_v32 }
  0x84   :  { %v35_v36 = vadd.f32 %v487_v30, %v34_v31 }
  0x86   :  { %v58_v37 = vpop.permute.xlu1 %57  ;;  %v38_v38 = vpop.permute.xlu0 %37 }
  0x87   :  { %v44_v41 = vmul.f32 %v43_v33, %v38_v38  ;;  %v64_v47 = vmul.f32 %v63_v40, %v58_v37  ;;  %v133_v33 = vrot.slane %v14_v58, %v637_v27 }
  0x89   :  { %v45_v44 = vadd.f32 %v44_v41, %v35_v36 }
  0x8b   :  { %v55_v48 = vadd.f32 %v54_v43, %v45_v44  ;;  %v68_v49 = vpop.permute.xlu1 %67  ;;  %v78_v50 = vpop.permute.xlu0 %77 }
  0x8c   :  { %v74_v51 = vmul.f32 %v73_v42, %v68_v49  ;;  %v84_v53 = vmul.f32 %v83_v45, %v78_v50  ;;  %v153_v42 = vrot.slane %v14_v58, %v645_v34 }
  0x8d   :  { %v65_v52 = vadd.f32 %v64_v47, %v55_v48  ;;  %v163_v47 = vrot.slane %v14_v58, %v648_v39  ;;  %v173_v48 = vrot.slane %v14_v58, %v653_v46 }
  0x8f   :  { %v75_v56 = vadd.f32 %v74_v51, %v65_v52 }
  0x90   :  { %v88_v57 = vpop.permute.xlu1 %87  ;;  %v108_v0 = vpop.permute.xlu0 %107 }
  0x91   :  { %v85_v59 = vadd.f32 %v84_v53, %v75_v56  ;;  %v94_v60 = vmul.f32 %v93_v54, %v88_v57  ;;  %v114_v28 = vmul.f32 %v113_v62, %v108_v0  ;;  %v183_v56 = vrot.slane %v14_v58, %v656_v55  ;;  %v15_v57 = vld [vmem:[%s742_s1 + $0x10] sm:$0xf] }
  0x92   :  { %v193_v62 = vrot.slane %v15_v57, %v629_v23 }
  0x93   :  { %v95_v4 = vadd.f32 %v94_v60, %v85_v59 }
  0x95   :  { %v98_v63 = vpop.permute.xlu1 %97  ;;  %v138_v37 = vpop.permute.xlu0 %137 }
  0x96   :  { %v104_v21 = vmul.f32 %v103_v61, %v98_v63  ;;  %v144_v41 = vmul.f32 %v143_v35, %v138_v37  ;;  %v203_v63 = vrot.slane %v15_v57, %v635_v26 }
  0x98   :  { %v105_v25 = vadd.f32 %v104_v21, %v95_v4 }
  0x9a   :  { %v118_v29 = vpop.permute.xlu1 %117  ;;  %v115_v30 = vadd.f32 %v114_v28, %v105_v25  ;;  %v168_v50 = vpop.permute.xlu0 %167 }
  0x9b   :  { %v124_v31 = vmul.f32 %v123_v22, %v118_v29  ;;  %v174_v54 = vmul.f32 %v173_v48, %v168_v50  ;;  %v213_v29 = vrot.slane %v15_v57, %v637_v27 }
  0x9d   :  { %v125_v24 = vadd.f32 %v124_v31, %v115_v30 }
  0x9f   :  { %v128_v36 = vpop.permute.xlu1 %127  ;;  %v198_v4 = vpop.permute.xlu0 %197 }
  0xa0   :  { %v134_v38 = vmul.f32 %v133_v33, %v128_v36  ;;  %v204_v22 = vmul.f32 %v203_v63, %v198_v4  ;;  %v223_v33 = vrot.slane %v15_v57, %v642_v32 }
  0xa2   :  { %v135_v40 = vadd.f32 %v134_v38, %v125_v24 }
  0xa4   :  { %v148_v43 = vpop.permute.xlu1 %147  ;;  %v145_v44 = vadd.f32 %v144_v41, %v135_v40 }
  0xa5   :  { %v154_v45 = vmul.f32 %v153_v42, %v148_v43 }
  0xa7   :  { %v155_v51 = vadd.f32 %v154_v45, %v145_v44 }
  0xa9   :  { %v158_v49 = vpop.permute.xlu1 %157 }
  0xaa   :  { %v164_v52 = vmul.f32 %v163_v47, %v158_v49 }
  0xac   :  { %v165_v53 = vadd.f32 %v164_v52, %v155_v51 }
  0xae   :  { %v178_v59 = vpop.permute.xlu1 %177  ;;  %v175_v60 = vadd.f32 %v174_v54, %v165_v53  ;;  %v18_v54 = vld [vmem:[%s742_s1 + $0x28] sm:$0xff] }
  0xaf   :  { %v184_v61 = vmul.f32 %v183_v56, %v178_v59  ;;  %v319_v59 = vrot.slane %v18_v54, %v629_v23 }
  0xb1   :  { %v185_v21 = vadd.f32 %v184_v61, %v175_v60  ;;  %v329_v61 = vrot.slane %v18_v54, %v635_v26 }
  0xb3   :  { %v188_v0 = vpop.permute.xlu1 %187 }
  0xb4   :  { %v194_v25 = vmul.f32 %v193_v62, %v188_v0 }
  0xb6   :  { %v195_v28 = vadd.f32 %v194_v25, %v185_v21  ;;  %v339_v21 = vrot.slane %v18_v54, %v637_v27 }
  0xb8   :  { %v208_v58 = vpop.permute.xlu1 %207  ;;  %v205_v30 = vadd.f32 %v204_v22, %v195_v28 }
  0xb9   :  { %v214_v31 = vmul.f32 %v213_v29, %v208_v58  ;;  %v349_v58 = vrot.slane %v18_v54, %v642_v32 }
  0xbb   :  { %v215_v36 = vadd.f32 %v214_v31, %v205_v30  ;;  %v359_v31 = vrot.slane %v18_v54, %v645_v34 }
  0xbd   :  { %v218_v35 = vpop.permute.xlu1 %217 }
  0xbe   :  { %v224_v37 = vmul.f32 %v223_v33, %v218_v35 }
  0xc0   :  { %v225_v24 = vadd.f32 %v224_v37, %v215_v36 }
  0xc2   :  { %v226_v38 = vmax.f32 %v225_v24, 0.0  ;;  %v369_v24 = vrot.slane %v18_v54, %v648_v39 }
  0xc4   :  { %243 = vperm.xlu1 %538, %v226_v38   ;;  %233 = vperm.xlu0 %537, %v226_v38  }
  0xc8   :  { %539 = vset.pattern.permute.xlu1 %v570_v1  ;;  %540 = vset.pattern.permute.xlu0 %v572_v3  ;;  %v17_v1 = vld [vmem:[%s742_s1 + $0x20] sm:$0xff] }
  0xc9   :  { %253 = vperm.xlu1 %539, %v226_v38   ;;  %263 = vperm.xlu0 %540, %v226_v38   ;;  %v239_v3 = vrot.slane %v17_v1, %v629_v23  ;;  %v289_v43 = vrot.slane %v17_v1, %v648_v39  ;;  %v299_v47 = vrot.slane %v17_v1, %v653_v46 }
  0xca   :  { %v309_v51 = vrot.slane %v17_v1, %v656_v55 }
  0xcd   :  { %541 = vset.pattern.permute.xlu1 %v574_v5  ;;  %543 = vset.pattern.permute.xlu0 %v576_v7  ;;  %v249_v5 = vrot.slane %v17_v1, %v635_v26  ;;  %v488_v7 = vld [vmem:[%s742_s1 + $0x38] ss:$0 sm:$0xff] }
  0xce   :  { %273 = vperm.xlu1 %541, %v226_v38   ;;  %293 = vperm.xlu0 %543, %v226_v38  }
  0xd2   :  { %542 = vset.pattern.permute.xlu1 %v575_v6  ;;  %546 = vset.pattern.permute.xlu0 %v580_v11 }
  0xd3   :  { %283 = vperm.xlu1 %542, %v226_v38   ;;  %323 = vperm.xlu0 %546, %v226_v38  }
  0xd7   :  { %544 = vset.pattern.permute.xlu1 %v578_v9  ;;  %549 = vset.pattern.permute.xlu0 %v584_v15 }
  0xd8   :  { %303 = vperm.xlu1 %544, %v226_v38   ;;  %353 = vperm.xlu0 %549, %v226_v38  }
  0xdc   :  { %545 = vset.pattern.permute.xlu1 %v577_v8  ;;  %552 = vset.pattern.permute.xlu0 %v586_v17 }
  0xdd   :  { %313 = vperm.xlu1 %545, %v226_v38   ;;  %383 = vperm.xlu0 %552, %v226_v38  }
  0xe1   :  { %547 = vset.pattern.permute.xlu1 %v582_v13  ;;  %555 = vset.pattern.permute.xlu0 %v588_v19  ;;  %v279_v19 = vrot.slane %v17_v1, %v645_v34  ;;  %v19_v34 = vld [vmem:[%s742_s1 + $0x30] sm:$0xf] }
  0xe2   :  { %333 = vperm.xlu1 %547, %v226_v38   ;;  %413 = vperm.xlu0 %555, %v226_v38  }
  0xe6   :  { %548 = vset.pattern.permute.xlu1 %v579_v10  ;;  %557 = vset.pattern.permute.xlu0 %v589_v20  ;;  %v259_v10 = vrot.slane %v17_v1, %v637_v27 }
  0xe7   :  { %343 = vperm.xlu1 %548, %v226_v38  }
  0xeb   :  { %550 = vset.pattern.permute.xlu1 %v585_v16  ;;  %v269_v16 = vrot.slane %v17_v1, %v642_v32 }
  0xec   :  { %363 = vperm.xlu1 %550, %v226_v38  }
  0xf0   :  { %551 = vset.pattern.permute.xlu1 %v581_v12 }
  0xf1   :  { %373 = vperm.xlu1 %551, %v226_v38  }
  0xf5   :  { %553 = vset.pattern.permute.xlu1 %v587_v18 }
  0xf6   :  { %393 = vperm.xlu1 %553, %v226_v38  }
  0xfa   :  { %554 = vset.pattern.permute.xlu1 %v583_v14 }
  0xfb   :  { %403 = vperm.xlu1 %554, %v226_v38  }
  0xff   :  { %556 = vset.pattern.permute.xlu1 %v589_v20 }
 0x100   :  { %423 = vperm.xlu1 %556, %v226_v38  }
 0x143   :  { %v244_v6 = vpop.permute.xlu1 %243  ;;  %v234_v8 = vpop.permute.xlu0 %233 }
 0x144   :  { %v240_v9 = vmul.f32 %v239_v3, %v234_v8  ;;  %v250_v11 = vmul.f32 %v249_v5, %v244_v6  ;;  %v379_v6 = vrot.slane %v18_v54, %v653_v46  ;;  %v389_v8 = vrot.slane %v18_v54, %v656_v55 }
 0x145   :  { %v419_v46 = vrot.slane %v19_v34, %v637_v27 }
 0x146   :  { %v241_v12 = vadd.f32 %v488_v7, %v240_v9 }
 0x148   :  { %v254_v13 = vpop.permute.xlu1 %253  ;;  %v251_v14 = vadd.f32 %v250_v11, %v241_v12  ;;  %v264_v17 = vpop.permute.xlu0 %263 }
 0x149   :  { %v260_v15 = vmul.f32 %v259_v10, %v254_v13  ;;  %v270_v20 = vmul.f32 %v269_v16, %v264_v17  ;;  %v399_v13 = vrot.slane %v19_v34, %v629_v23  ;;  %v409_v17 = vrot.slane %v19_v34, %v635_v26 }
 0x14b   :  { %v261_v18 = vadd.f32 %v260_v15, %v251_v14 }
 0x14d   :  { %v274_v40 = vpop.permute.xlu1 %273  ;;  %v271_v41 = vadd.f32 %v270_v20, %v261_v18  ;;  %v294_v49 = vpop.permute.xlu0 %293 }
 0x14e   :  { %v280_v42 = vmul.f32 %v279_v19, %v274_v40  ;;  %v300_v52 = vmul.f32 %v299_v47, %v294_v49  ;;  %v429_v40 = vrot.slane %v19_v34, %v642_v32 }
 0x150   :  { %v281_v45 = vadd.f32 %v280_v42, %v271_v41 }
 0x152   :  { %v284_v44 = vpop.permute.xlu1 %283  ;;  %v324_v0 = vpop.permute.xlu0 %323 }
 0x153   :  { %v290_v48 = vmul.f32 %v289_v43, %v284_v44  ;;  %v330_v25 = vmul.f32 %v329_v61, %v324_v0 }
 0x155   :  { %v291_v50 = vadd.f32 %v290_v48, %v281_v45 }
 0x157   :  { %v304_v53 = vpop.permute.xlu1 %303  ;;  %v301_v56 = vadd.f32 %v300_v52, %v291_v50  ;;  %v354_v36 = vpop.permute.xlu0 %353 }
 0x158   :  { %v310_v57 = vmul.f32 %v309_v51, %v304_v53  ;;  %v360_v38 = vmul.f32 %v359_v31, %v354_v36 }
 0x15a   :  { %v311_v62 = vadd.f32 %v310_v57, %v301_v56 }
 0x15c   :  { %v314_v60 = vpop.permute.xlu1 %313  ;;  %v384_v11 = vpop.permute.xlu0 %383 }
 0x15d   :  { %v320_v63 = vmul.f32 %v319_v59, %v314_v60  ;;  %v390_v39 = vmul.f32 %v389_v8, %v384_v11 }
 0x15f   :  { %v321_v4 = vadd.f32 %v320_v63, %v311_v62 }
 0x161   :  { %v334_v28 = vpop.permute.xlu1 %333  ;;  %v331_v22 = vadd.f32 %v330_v25, %v321_v4  ;;  %v414_v18 = vpop.permute.xlu0 %413 }
 0x162   :  { %v340_v29 = vmul.f32 %v339_v21, %v334_v28  ;;  %v420_v41 = vmul.f32 %v419_v46, %v414_v18 }
 0x164   :  { %v341_v33 = vadd.f32 %v340_v29, %v331_v22 }
 0x166   :  { %v344_v30 = vpop.permute.xlu1 %343 }
 0x167   :  { %v350_v35 = vmul.f32 %v349_v58, %v344_v30 }
 0x169   :  { %v351_v37 = vadd.f32 %v350_v35, %v341_v33 }
 0x16b   :  { %v364_v1 = vpop.permute.xlu1 %363  ;;  %v361_v3 = vadd.f32 %v360_v38, %v351_v37 }
 0x16c   :  { %v370_v5 = vmul.f32 %v369_v24, %v364_v1 }
 0x16e   :  { %v371_v9 = vadd.f32 %v370_v5, %v361_v3 }
 0x170   :  { %v374_v7 = vpop.permute.xlu1 %373 }
 0x171   :  { %v380_v10 = vmul.f32 %v379_v6, %v374_v7 }
 0x173   :  { %v381_v12 = vadd.f32 %v380_v10, %v371_v9 }
 0x175   :  { %v394_v14 = vpop.permute.xlu1 %393  ;;  %v391_v15 = vadd.f32 %v390_v39, %v381_v12 }
 0x176   :  { %v400_v16 = vmul.f32 %v399_v13, %v394_v14 }
 0x178   :  { %v401_v19 = vadd.f32 %v400_v16, %v391_v15 }
 0x17a   :  { %v404_v55 = vpop.permute.xlu1 %403 }
 0x17b   :  { %v410_v20 = vmul.f32 %v409_v17, %v404_v55 }
 0x17d   :  { %v411_v42 = vadd.f32 %v410_v20, %v401_v19 }
 0x17f   :  { %v424_v43 = vpop.permute.xlu1 %423  ;;  %v421_v44 = vadd.f32 %v420_v41, %v411_v42 }
 0x180   :  { %v430_v45 = vmul.f32 %v429_v40, %v424_v43 }
 0x182   :  { %v431_v23 = vadd.f32 %v430_v45, %v421_v44 }
 0x184   :  { %v433_v47 = vsel %vm432_vm0, %v431_v23, 0.0  ;;  %v444_v48 = vand.u32 2147483647, %v431_v23 }
 0x185   :  { %434 = vadd.xlane.f32.xlu1 %v433_v47 }
 0x186   :  { %v445_v49 = vsel %vm432_vm0, %v444_v48, 0.0 }
 0x187   :  { %446 = vadd.xlane.f32.xlu0 %v445_v49 }
 0x212   :  { %v435_v26 = vpop.xlane.xlu1 %434 }
 0x213   :  { %v436_v27 = vrot.slane %v435_v26, 4 }
 0x214   :  { %v447_v50 = vpop.xlane.xlu0 %446 }
 0x215   :  { %v437_v51 = vadd.f32 %v436_v27, %v435_v26  ;;  %v448_v52 = vrot.slane %v447_v50, 4 }
 0x217   :  { %v438_v53 = vrot.slane %v437_v51, 2  ;;  %v449_v54 = vadd.f32 %v448_v52, %v447_v50 }
 0x219   :  { %v450_v32 = vrot.slane %v449_v54, 2  ;;  %v439_v56 = vadd.f32 %v438_v53, %v437_v51 }
 0x21b   :  { %v451_v57 = vadd.f32 %v450_v32, %v449_v54  ;;  %v440_v59 = vrot.slane %v439_v56, 1 }
 0x21d   :  { %v441_v60 = vadd.f32 %v440_v59, %v439_v56  ;;  %v452_v61 = vrot.slane %v451_v57, 1 }
 0x21f   :  { %490 = vpush %v441_v60  ;;  %v453_v62 = vadd.f32 %v452_v61, %v451_v57 }
 0x221   :  { %492 = vpush %v453_v62 }
 0x250   :  { %s491_s1 = spop %490 }
 0x251   :  { %v443_v31 = vstv %s491_s1 }
 0x252   :  { %s493_s26 = spop %492 }
 0x253   :  { %v455_v63 = vstv %s493_s26 }
 0x254   :  { %v457_v0 = vshra.s32 %v455_v63, 23  ;;  %v459_v4 = vand.u32 8388607, %v455_v63 }
 0x256   :  { %v489_v21 = vadd.s32 4294967169, %v457_v0  ;;  %vm460_vm1 = vcmp.ne.s32.totalorder %v459_v4, 0 }
 0x257   :  { %v461_v25 = vsel %vm460_vm1, 1, %v571_v2 }
 0x258   :  { %v462_v28 = vadd.s32 %v489_v21, %v461_v25 }
 0x25a   :  { %vm463_vm2 = vcmp.gt.s32.totalorder %v462_v28, 0 }
 0x25b   :  { %v464_v22 = vsel %vm463_vm2, %v462_v28, 0 }
 0x25c   :  { %vm465_vm3 = vcmp.lt.s32.totalorder %v464_v22, 126 }
 0x25d   :  { %v466_v29 = vsel %vm465_vm3, %v464_v22, 126 }
 0x25e   :  { %v467_v58 = vsub.s32 127, %v466_v29 }
 0x260   :  { %v468_v30 = vshll.u32 %v467_v58, 23 }
 0x262   :  { %v470_v33 = vmul.f32 %v468_v30, %v443_v31 }
 0x264   :  { %494 = vpush %v470_v33 }
 0x295   :  { %s495_s27 = spop %494 }
 0x296   :  { %473 = sst [smem:[#allocation2]] %s495_s27 }
 0x297   :  { %567 = shalt.err (!%p564_p2)
}
 0x298   :  { %s590_s7 = smov [#allocation2]  }
 0x299   :  { %481 = dma.smem_to_hbm %s590_s7, 16, %s743_s2, [#allocation3]  }
 0x29a   :  { %568 = dma.done.wait [#allocation3], 16  }
 0x29b   :  { %569 = vsyncadd [#allocation3], 4294967280 }
 0x29c   :  { %485 = sfence }
 0x29d   :  { %486 = vsyncpa [#allocation3], 1 }

</bundles_post_ra>
